<compile_context>
chip_gen: v6e
topology: v6e:2x2x1
jax: 0.10.0
libtpu: 0.0.40
codegen_flags: <defaults>
</compile_context>

<pallas_src>
import functools

import jax
import jax.numpy as jnp
from jax.experimental import pallas as pl
from jax.experimental.pallas import tpu as pltpu

_MIN_GRID_BLOCKS = 8  # >= 4 blocks per TensorCore on v7x; keeps double-buffering busy


# ----------------------------------------------------------------------------- kernels
def _lane_reduce_kernel(x_ref, o_ref, *, power):
    """Normalize each row of a (tile_n, D) block over the last (lane) axis."""
    x = x_ref[...].astype(jnp.float32)
    if power == 2:
        norm = jnp.sqrt(jnp.sum(x * x, axis=-1, keepdims=True))
    else:
        # Generic p (matches torch.pow, incl. NaN for non-integer p with negative x).
        norm = jnp.sum(x ** power, axis=-1, keepdims=True) ** (1.0 / power)
    # One exact divide per row; the hot [tile_n, D] path is a single VPU multiply per
    # vreg.  Do NOT switch to pl.reciprocal(approx=True): the kernel is DMA-bound and
    # the approximation risks the 1e-5 tolerance for zero wall-clock gain.
    inv = 1.0 / (norm + 1e-7)
    o_ref[...] = (x * inv).astype(o_ref.dtype)


def _channel_reduce_kernel(x_ref, o_ref, *, power):
    """Normalize a (..., C, tile_hw) block over the channel (sublane, axis=-2) axis."""
    x = x_ref[...].astype(jnp.float32)
    if power == 2:
        norm = jnp.sqrt(jnp.sum(x * x, axis=-2, keepdims=True))
    else:
        norm = jnp.sum(x ** power, axis=-2, keepdims=True) ** (1.0 / power)
    inv = 1.0 / (norm + 1e-7)
    o_ref[...] = (x * inv).astype(o_ref.dtype)


# ----------------------------------------------------------------------------- tiling
def _sublane_multiple(dtype):
    # f32 -> 8, bf16 -> 16, int8/fp8 -> 32 (packed-sublane alignment).
    return max(8, 32 // jnp.dtype(dtype).itemsize)


def _vmem_budgets():
    """(per-block byte budget, scoped-VMEM limit) derived from the chip generation.

    4 double-buffered blocks (in + out) plus in-kernel f32 temps must fit under the
    scoped limit: ~6 MiB blocks / 64 MiB limit is safe on v5e/v6e (128 MiB physical);
    v7x only has 64 MiB physical, so stay at 4 MiB blocks / 32 MiB scoped there.
    """
    try:
        phys = getattr(pltpu.get_tpu_info(), "vmem_capacity_bytes", 64 * 1024 * 1024)
    except Exception:  # interpret / CPU fallback
        phys = 64 * 1024 * 1024
    if phys >= 96 * 1024 * 1024:       # v5e / v6e
        return 6 * 1024 * 1024, 64 * 1024 * 1024
    return 4 * 1024 * 1024, 32 * 1024 * 1024   # v7x (and conservative default)


def _choose_tile_n(N, D, dtype, block_budget):
    """Largest row tile fitting the per-block budget, capped for >= ~8 grid blocks."""
    sub = _sublane_multiple(dtype)
    itemsize = jnp.dtype(dtype).itemsize
    tile = block_budget // max(D * itemsize, 1)
    tile = max(sub, (tile // sub) * sub)
    # Keep the grid >= ~8 blocks when N permits: overlaps DMA with compute and gives
    # each v7x TensorCore several blocks instead of one.
    if N >= _MIN_GRID_BLOCKS * sub:
        per_block = pl.cdiv(pl.cdiv(N, _MIN_GRID_BLOCKS), sub) * sub
        tile = min(tile, per_block)
    tile = min(tile, pl.cdiv(N, sub) * sub)   # never tile past the row count
    return max(tile, sub)


# ---------------------------------------------------------------------------- wrappers
def normalize(x, *, power=2, tile_n=None):
    """L-p normalize each row of a 2-D [N, D] array over the last (lane) axis."""
    N, D = x.shape
    block_budget, vmem_limit = _vmem_budgets()

    # Lane padding: zero columns contribute 0 to the p-norm (p > 0), and a 128-multiple
    # last dim turns masked vst.msk partial stores into full-width vst.
    pad = (-D) % 128
    do_pad = pad > 0 and power > 0
    if do_pad:
        x = jnp.pad(x, ((0, 0), (0, pad)))
    Dp = x.shape[1]

    if tile_n is None:
        tile_n = _choose_tile_n(N, Dp, x.dtype, block_budget)
    grid = (pl.cdiv(N, tile_n),)              # partial last block handled by Pallas
    kernel = functools.partial(_lane_reduce_kernel, power=power)

    out = pl.pallas_call(
        kernel,
        out_shape=jax.ShapeDtypeStruct((N, Dp), x.dtype),
        grid_spec=pltpu.PrefetchScalarGridSpec(
            num_scalar_prefetch=0,
            grid=grid,
            in_specs=[pl.BlockSpec((tile_n, Dp), lambda i: (i, 0))],
            out_specs=pl.BlockSpec((tile_n, Dp), lambda i: (i, 0)),
        ),
        # TODO(synk): confirm in an xprof trace that "parallel" shards the row grid
        # across both v7x TensorCores; if not, switch to pltpu.CORE_PARALLEL.
        compiler_params=pltpu.CompilerParams(
            dimension_semantics=("parallel",),
            vmem_limit_bytes=vmem_limit,
        ),
    )(x)
    return out[:, :D] if do_pad else out


def normalize_channels(x, *, power=2):
    """Normalize a [N, C, HW] array over the C axis (sublanes); HW sits on lanes."""
    N, C, HW = x.shape
    block_budget, vmem_limit = _vmem_budgets()
    itemsize = jnp.dtype(x.dtype).itemsize
    kernel = functools.partial(_channel_reduce_kernel, power=power)
    img_bytes = C * HW * itemsize

    if img_bytes <= block_budget:
        # Whole (C, HW) images fit in a block: batch several per block, tile over N.
        # N is not a lane/sublane dim, so any tile_n is layout-legal.
        tile_n = min(max(1, block_budget // img_bytes), N)
        if N >= _MIN_GRID_BLOCKS:
            tile_n = min(tile_n, pl.cdiv(N, _MIN_GRID_BLOCKS))
        grid = (pl.cdiv(N, tile_n),)
        in_spec = pl.BlockSpec((tile_n, C, HW), lambda i: (i, 0, 0))
        out_spec = pl.BlockSpec((tile_n, C, HW), lambda i: (i, 0, 0))
        dims = ("parallel",)
    else:
        # One image per block is already too big: tile the flattened spatial (lane)
        # axis in 128-multiples; the channel axis stays whole on sublanes.
        # TODO(synk): if C*128 lanes alone overflows the budget (C ~ 100K+), add an
        # "arbitrary" grid axis over C with a running-sum accumulator.
        tile_hw = max(128, (block_budget // max(C * itemsize, 1)) // 128 * 128)
        if N * pl.cdiv(HW, tile_hw) < _MIN_GRID_BLOCKS:
            need = pl.cdiv(_MIN_GRID_BLOCKS, N)
            tile_hw = min(tile_hw, max(128, pl.cdiv(pl.cdiv(HW, need), 128) * 128))
        tile_hw = min(tile_hw, pl.cdiv(HW, 128) * 128)
        if tile_hw >= HW:
            tile_hw = HW   # full-extent block is legal even when HW % 128 != 0
        grid = (N, pl.cdiv(HW, tile_hw))
        in_spec = pl.BlockSpec((None, C, tile_hw), lambda n, j: (n, 0, j))
        out_spec = pl.BlockSpec((None, C, tile_hw), lambda n, j: (n, 0, j))
        dims = ("parallel", "parallel")

    return pl.pallas_call(
        kernel,
        out_shape=jax.ShapeDtypeStruct((N, C, HW), x.dtype),
        grid_spec=pltpu.PrefetchScalarGridSpec(
            num_scalar_prefetch=0,
            grid=grid,
            in_specs=[in_spec],
            out_specs=out_spec,
        ),
        compiler_params=pltpu.CompilerParams(
            dimension_semantics=dims,
            vmem_limit_bytes=vmem_limit,
        ),
    )(x)


def normalize_dim1(x, *, power=2):
    """Matches torch Normalize.forward (reduction over dim 1) for any rank >= 2 input."""
    if x.ndim == 2:
        return normalize(x, power=power)       # dim 1 is already the last (lane) axis
    N, C = int(x.shape[0]), int(x.shape[1])
    hw = 1
    for s in x.shape[2:]:
        hw *= int(s)
    # Contiguous reshape (no HBM transpose); channel axis reduced on sublanes.
    out3 = normalize_channels(x.reshape(N, C, hw), power=power)
    return out3.reshape(x.shape)


def normalize_ref(x, power=2):
    """Pure-JAX reference matching the PyTorch forward exactly."""
    norm = jnp.sum(x ** power, axis=1, keepdims=True) ** (1.0 / power)
    return x / (norm + 1e-7)


if __name__ == "__main__":
    key = jax.random.PRNGKey(0)
    k1, k2, k3 = jax.random.split(key, 3)

    # 4-D NCHW usage (the nn.Module's main use case): reduction over the channel dim.
    x4 = jax.random.normal(k1, (2, 4, 16, 16), dtype=jnp.float32)
    out4 = jax.block_until_ready(normalize_dim1(x4))
    ref4 = normalize_ref(x4)
    assert out4.shape == x4.shape
    assert jnp.allclose(out4, ref4, atol=1e-5, rtol=1e-5), "4-D mismatch vs reference"

    # 2-D PatchNCE-style usage: (num_patches, feature_dim), lane-dense last dim.
    x2 = jax.random.normal(k2, (64, 256), dtype=jnp.float32)
    out2 = jax.block_until_ready(normalize_dim1(x2))
    ref2 = normalize_ref(x2)
    assert out2.shape == x2.shape
    assert jnp.allclose(out2, ref2, atol=1e-5, rtol=1e-5), "2-D mismatch vs reference"

    # 2-D with a non-128-multiple feature dim (exercises the lane-padding path).
    x2b = jax.random.normal(k3, (32, 96), dtype=jnp.float32)
    out2b = jax.block_until_ready(normalize_dim1(x2b))
    ref2b = normalize_ref(x2b)
    assert out2b.shape == x2b.shape
    assert jnp.allclose(out2b, ref2b, atol=1e-5, rtol=1e-5), "padded 2-D mismatch vs reference"

    print("KERNEL_OK")
</pallas_src>

<mosaic_0001>
module attributes {stable_mosaic.version = 11 : i64} {
  func.func @_channel_reduce_kernel(%arg0: i32, %arg1: memref<2x4x256xf32, #tpu.memory_space<vmem>>, %arg2: memref<2x4x256xf32, #tpu.memory_space<vmem>>) attributes {dimension_semantics = [#tpu.dimension_semantics<parallel>], iteration_bounds = array<i64: 1>, scalar_prefetch = 0 : i64, scratch_operands = 0 : i64, tpu.core_type = #tpu.core_type<tc>, window_params = [{transform_indices = @transform_0, window_bounds = array<i64: 2, 4, 256>}, {transform_indices = @transform_1, window_bounds = array<i64: 2, 4, 256>}]} {
    %c0 = arith.constant 0 : index
    %c0_0 = arith.constant 0 : index
    %c0_1 = arith.constant 0 : index
    %0 = vector.load %arg1[%c0, %c0_0, %c0_1] : memref<2x4x256xf32, #tpu.memory_space<vmem>>, vector<2x4x256xf32>
    %1 = arith.mulf %0, %0 : vector<2x4x256xf32>
    %cst = arith.constant dense<0.000000e+00> : vector<2x256xf32>
    %2 = vector.multi_reduction <add>, %1, %cst [1] : vector<2x4x256xf32> to vector<2x256xf32>
    %3 = vector.shape_cast %2 : vector<2x256xf32> to vector<2x1x256xf32>
    %4 = math.sqrt %3 : vector<2x1x256xf32>
    %cst_2 = arith.constant 1.000000e-07 : f32
    %5 = vector.broadcast %cst_2 : f32 to vector<2x1x256xf32>
    %6 = arith.addf %4, %5 : vector<2x1x256xf32>
    %cst_3 = arith.constant 1.000000e+00 : f32
    %7 = vector.broadcast %cst_3 : f32 to vector<2x1x256xf32>
    %8 = arith.divf %7, %6 : vector<2x1x256xf32>
    %9 = vector.broadcast %8 : vector<2x1x256xf32> to vector<2x4x256xf32>
    %10 = arith.mulf %0, %9 : vector<2x4x256xf32>
    %c0_4 = arith.constant 0 : index
    %c0_5 = arith.constant 0 : index
    %c0_6 = arith.constant 0 : index
    %11 = vector.load %arg2[%c0_4, %c0_5, %c0_6] : memref<2x4x256xf32, #tpu.memory_space<vmem>>, vector<2x4x256xf32>
    tpu.vector_store %arg2[%c0_4, %c0_5, %c0_6], %10 {strides = array<i32>} : memref<2x4x256xf32, #tpu.memory_space<vmem>>, vector<2x4x256xf32>,
    return
  }
  func.func @transform_0(%arg0: i32) -> (i32, i32, i32) {
    %c0_i32 = arith.constant 0 : i32
    %c0_i32_0 = arith.constant 0 : i32
    %c0_i32_1 = arith.constant 0 : i32
    return %arg0, %c0_i32, %c0_i32_0 : i32, i32, i32
  }
  func.func @transform_1(%arg0: i32) -> (i32, i32, i32) {
    %c0_i32 = arith.constant 0 : i32
    %c0_i32_0 = arith.constant 0 : i32
    %c0_i32_1 = arith.constant 0 : i32
    return %arg0, %c0_i32, %c0_i32_0 : i32, i32, i32
  }
}

</mosaic_0001>

<bundles_post_ra>
// kernel: tpu_custom_call.1
= control target key start
LH: loop header
LB: loop body
LE: loop exit
PB: predicated region body
PF: predicated region fallthrough
CT: control target
= control target key end

     0   :  { %6 = vsyncpa [#allocation3], 0  ;;  %s234_s0 = inlined_call_operand.hbm [shape: f32[2,4,256], index: 0, kind: input, shape index: {}]   ;;  %s235_s1 = inlined_call_operand.hbm [shape: f32[2,4,256], index: 1, kind: output, shape index: {}]  }
   0x1   :  { %7 = vsyncpa [#allocation4], 0  ;;  %s195_s6 = smov [#allocation2]  }
   0x2   :  { %s13_s7 = sshll.u32 %s195_s6, 4  ;;  %s14_s7 = int_to_ptr.vmem [resolvable:$true] %s13_s7 }
   0x3   :  { %s159_s8 = scalar_lea.vmem %s14_s7, 256  ;;  %p164_p1 = scmp.lt.s32.totalorder %s14_s7, %s14_s7 }
   0x4   :  { %p160_p0 = scmp.ne.s32.totalorder %s14_s7, %s159_s8  ;;  %p165_p2 = scmp.lt.s32.totalorder %s159_s8, %s159_s8 }
   0x6   :  { %p166_p3 = por %p165_p2, %p164_p1 }
   0x8   :  { %p167_p4 = pnand %p166_p3, %p160_p0 }
   0xa   :  { %170 = shalt.err (!%p167_p4)
}
   0xb   :  { %s196_s9 = smov 128   ;;  %s197_s10 = smov 8  }
   0xc   :  { %19 = dma.hbm_to_vmem [thread:$0]  %s234_s0, 256, %s14_s7, [#allocation3], %s196_s9, %s196_s9, %s197_s10  }
   0xd   :  { %191 = dma.done.wait [#allocation3], 256  }
   0xe   :  { %192 = vsyncadd [#allocation3], 4294967040  ;;  %v215_v0 = vld [vmem:[#allocation2] sm:$0xff]  ;;  %vm33_vm0 = vcmask 1043456   ;;  %v217_v1 = vld [vmem:[#allocation2 + $0x8] sm:$0xff]  ;;  %s198_s0 = smov [#allocation5]  }
   0xf   :  { %v25_v2 = vmul.f32 %v215_v0, %v215_v0  ;;  %v26_v3 = vmul.f32 %v217_v1, %v217_v1  ;;  %s119_s13 = sshll.u32 %s198_s0, 4  ;;  %s120_s13 = int_to_ptr.vmem [resolvable:$true] %s119_s13 }
  0x10   :  { %s171_s14 = scalar_lea.vmem %s120_s13, 256  ;;  %p176_p6 = scmp.lt.s32.totalorder %s120_s13, %s120_s13 }
  0x11   :  { %v29_v4 = vcombine.high %v25_v2, %v25_v2  ;;  %v34_v5 = vsel %vm33_vm0, %v25_v2, 0.0  ;;  %v30_v6 = vcombine.high %v26_v3, %v26_v3  ;;  %v48_v7 = vsel %vm33_vm0, %v26_v3, 0.0  ;;  %p172_p5 = scmp.ne.s32.totalorder %s120_s13, %s171_s14  ;;  %p177_p7 = scmp.lt.s32.totalorder %s171_s14, %s171_s14 }
  0x12   :  { %v35_v8 = vrot.slane %v34_v5, 4  ;;  %v49_v9 = vrot.slane %v48_v7, 4 }
  0x13   :  { %v41_v10 = vsel %vm33_vm0, %v29_v4, 0.0  ;;  %v55_v11 = vsel %vm33_vm0, %v30_v6, 0.0  ;;  %p178_p8 = por %p177_p7, %p176_p6 }
  0x14   :  { %v36_v12 = vadd.f32 %v35_v8, %v34_v5  ;;  %v42_v13 = vrot.slane %v41_v10, 4  ;;  %v50_v14 = vadd.f32 %v49_v9, %v48_v7  ;;  %v56_v15 = vrot.slane %v55_v11, 4 }
  0x15   :  { %p179_p9 = pnand %p178_p8, %p172_p5 }
  0x16   :  { %v37_v16 = vrot.slane %v36_v12, 2  ;;  %v43_v17 = vadd.f32 %v42_v13, %v41_v10  ;;  %v51_v18 = vrot.slane %v50_v14, 2  ;;  %v57_v19 = vadd.f32 %v56_v15, %v55_v11 }
  0x18   :  { %v38_v20 = vadd.f32 %v37_v16, %v36_v12  ;;  %v44_v21 = vrot.slane %v43_v17, 2  ;;  %v52_v22 = vadd.f32 %v51_v18, %v50_v14  ;;  %v58_v23 = vrot.slane %v57_v19, 2 }
  0x1a   :  { %v39_v24 = vrot.slane %v38_v20, 1  ;;  %v45_v25 = vadd.f32 %v44_v21, %v43_v17  ;;  %v53_v26 = vrot.slane %v52_v22, 1  ;;  %v59_v27 = vadd.f32 %v58_v23, %v57_v19 }
  0x1c   :  { %v40_v28 = vadd.f32 %v39_v24, %v38_v20  ;;  %v46_v29 = vrot.slane %v45_v25, 1  ;;  %v54_v30 = vadd.f32 %v53_v26, %v52_v22  ;;  %v60_v31 = vrot.slane %v59_v27, 1 }
  0x1e   :  { %v47_v32 = vadd.f32 %v46_v29, %v45_v25  ;;  %135 = vrsqrt.f32 %v40_v28  ;;  %v61_v33 = vadd.f32 %v60_v31, %v59_v27  ;;  %vm64_vm1 = vcmp.eq.f32.partialorder %v40_v28, inf }
  0x1f   :  { %137 = vrsqrt.f32 %v54_v30  ;;  %vm66_vm2 = vcmp.eq.f32.partialorder %v40_v28, 0.0  ;;  %v67_v35 = vand.u32 2147483648, %v40_v28  ;;  %vm78_vm4 = vcmp.eq.f32.partialorder %v54_v30, inf }
  0x20   :  { %139 = vrsqrt.f32 %v47_v32  ;;  %vm71_vm3 = vcmp.eq.f32.partialorder %v47_v32, inf  ;;  %v81_v38 = vand.u32 2147483648, %v54_v30  ;;  %vm73_vm5 = vcmp.eq.f32.partialorder %v47_v32, 0.0 }
  0x21   :  { %141 = vrsqrt.f32 %v61_v33  ;;  %v74_v40 = vand.u32 2147483648, %v47_v32  ;;  %vm80_vm6 = vcmp.eq.f32.partialorder %v54_v30, 0.0  ;;  %vm85_vm7 = vcmp.eq.f32.partialorder %v61_v33, inf }
  0x22   :  { %v88_v45 = vand.u32 2147483648, %v61_v33  ;;  %vm87_vm8 = vcmp.eq.f32.partialorder %v61_v33, 0.0 }
  0x2b   :  { %v136_v34 = vpop.eup %135 }
  0x2c   :  { %v138_v36 = vpop.eup %137  ;;  %v63_v37 = vmul.f32 %v136_v34, %v40_v28 }
  0x2d   :  { %v140_v39 = vpop.eup %139  ;;  %v77_v41 = vmul.f32 %v138_v36, %v54_v30 }
  0x2e   :  { %v142_v42 = vpop.eup %141  ;;  %v65_v43 = vsel %vm64_vm1, %v40_v28, %v63_v37  ;;  %v70_v44 = vmul.f32 %v140_v39, %v47_v32 }
  0x2f   :  { %v68_v46 = vsel %vm66_vm2, %v67_v35, %v65_v43  ;;  %v79_v47 = vsel %vm78_vm4, %v54_v30, %v77_v41  ;;  %v84_v48 = vmul.f32 %v142_v42, %v61_v33 }
  0x30   :  { %v72_v49 = vsel %vm71_vm3, %v47_v32, %v70_v44  ;;  %v90_v50 = vadd.f32 1e-07, %v68_v46  ;;  %v82_v51 = vsel %vm80_vm6, %v81_v38, %v79_v47 }
  0x31   :  { %v75_v52 = vsel %vm73_vm5, %v74_v40, %v72_v49  ;;  %v86_v53 = vsel %vm85_vm7, %v61_v33, %v84_v48  ;;  %v92_v54 = vadd.f32 1e-07, %v82_v51 }
  0x32   :  { %v91_v55 = vadd.f32 1e-07, %v75_v52  ;;  %143 = vrcp.f32 %v90_v50  ;;  %v89_v56 = vsel %vm87_vm8, %v88_v45, %v86_v53 }
  0x33   :  { %v93_v57 = vadd.f32 1e-07, %v89_v56  ;;  %145 = vrcp.f32 %v92_v54 }
  0x34   :  { %147 = vrcp.f32 %v91_v55 }
  0x35   :  { %149 = vrcp.f32 %v93_v57 }
  0x3f   :  { %v144_v58 = vpop.eup %143 }
  0x40   :  { %v146_v59 = vpop.eup %145 }
  0x41   :  { %v148_v60 = vpop.eup %147 }
  0x42   :  { %v150_v61 = vpop.eup %149  ;;  %v106_v62 = vcombine.low %v144_v58, %v148_v60 }
  0x43   :  { %v107_v63 = vcombine.low %v146_v59, %v150_v61 }
  0x44   :  { %v110_v2 = vmul.f32 %v106_v62, %v215_v0 }
  0x45   :  { %v111_v3 = vmul.f32 %v107_v63, %v217_v1 }
  0x46   :  { %112 = vst [vmem:[#allocation5] sm:$0xff] %v110_v2 }
  0x47   :  { %113 = vst [vmem:[#allocation5 + $0x8] sm:$0xff] %v111_v3 }
  0x48   :  { %182 = shalt.err (!%p179_p9)
}
  0x49   :  { %125 = dma.vmem_to_hbm [thread:$0]  %s120_s13, 256, %s235_s1, [#allocation4], %s196_s9, %s196_s9, %s197_s10  }
  0x4a   :  { %193 = dma.done.wait [#allocation4], 256  }
  0x4b   :  { %194 = vsyncadd [#allocation4], 4294967040 }
  0x4c   :  { %129 = vsyncpa [#allocation3], 1 }
  0x4d   :  { %130 = vsyncpa [#allocation4], 1 }

</bundles_post_ra>
